<compile_context>
chip_gen: v7x
topology: tpu7x:2x2x1
jax: 0.10.0
libtpu: 0.0.40
codegen_flags: <defaults>
</compile_context>

<pallas_src>
import math

import jax
import jax.numpy as jnp
from jax import lax
from jax.experimental import pallas as pl
from jax.experimental.pallas import tpu as pltpu

MODEL_DIM = 1
SCALE = 1.0 / math.sqrt(MODEL_DIM)

_NUM_CORE_SLICES = 2                    # leading "parallel" grid axis (2 TCs on v7x; harmless elsewhere)
_VMEM_BLOCK_BUDGET = 16 * 1024 * 1024   # byte budget for the double-buffered input blocks
_VMEM_LIMIT = 32 * 1024 * 1024          # raise v5e's 16 MiB scoped default; fits v7x's 64 MiB physical


def _round_up(x, m):
    return -(-x // m) * m


def _make_nll_sum_kernel(c_pad):
    """Per core-slice partial sum of x1[i, x2[i]] (lane-dense layout)."""

    def kernel(x1_ref, tgt_ref, out_ref, acc_ref):
        step = pl.program_id(1)

        @pl.when(step == 0)
        def _init():
            acc_ref[...] = jnp.zeros_like(acc_ref)

        x = x1_ref[...].astype(jnp.float32)       # (TILE, 128); upcast after load (bf16-friendly)
        tgt = tgt_ref[...].astype(jnp.int32)      # (TILE, 128) per-lane class targets (-1 = padding)
        lane_class = lax.broadcasted_iota(jnp.int32, x.shape, 1) & (c_pad - 1)
        picked = jnp.where(lane_class == tgt, x, 0.0)
        # Pure VPU: fold TILE rows into the resident (8,128) vreg accumulator (no cross-lane reduce,
        # no masked 1-lane store in the hot loop).
        acc_ref[...] += picked.reshape(-1, 8, 128).sum(axis=0)

        @pl.when(step == pl.num_programs(1) - 1)
        def _finalize():
            # Single cross-lane/sublane reduce, done once per core slice; lane-dense output block.
            out_ref[...] = jnp.full(out_ref.shape, jnp.sum(acc_ref[...]), dtype=out_ref.dtype)

    return kernel


def model_forward(x1, x2, *, dropout_key=None):
    n, c = x1.shape
    if c > 128:
        # TODO(synk): C > 128 needs a multi-flat-row-per-example layout; not needed for this module.
        raise NotImplementedError("C > 128 not supported")

    # Pad classes to a power of two so C_pad divides 128 (padded classes are never selected).
    c_pad = 1
    while c_pad < c:
        c_pad *= 2
    rows_per_flat = 128 // c_pad

    # Tile rows from a VMEM byte budget: 2x double-buffered x1 + 2x double-buffered int8 targets.
    itemsize = jnp.dtype(x1.dtype).itemsize
    bytes_per_flat_row = 128 * (2 * itemsize + 2)
    tile_budget = max(32, (_VMEM_BLOCK_BUDGET // bytes_per_flat_row) // 32 * 32)

    n_flat = _round_up(n, rows_per_flat) // rows_per_flat          # flat rows holding real data
    per_core = _round_up(_round_up(n_flat, _NUM_CORE_SLICES) // _NUM_CORE_SLICES, 32)
    tile_flat = min(tile_budget, per_core)
    steps = _round_up(per_core, tile_flat) // tile_flat
    n_flat_pad = _NUM_CORE_SLICES * steps * tile_flat
    n_pad = n_flat_pad * rows_per_flat

    # Lane-dense x1: (n_pad, c_pad) viewed as (n_flat_pad, 128). Padding rows/cols are zero and
    # never selected, so they contribute 0 to the partial sums.
    x1_p = jnp.zeros((n_pad, c_pad), dtype=x1.dtype).at[:n, :c].set(x1)
    x1_flat = x1_p.reshape(n_flat_pad, 128)

    # Per-lane int8 targets: tgt_flat[r, l] = x2[r*rows_per_flat + l // c_pad]; -1 on padding rows.
    # TODO(synk): ignore_index / out-of-range targets contribute 0 but still count in the 1/N mean,
    #             unlike torch's ignore_index handling.
    tgt_rows = jnp.full((n_pad,), -1, dtype=jnp.int32).at[:n].set(x2.astype(jnp.int32))
    tgt_flat = jnp.repeat(tgt_rows, c_pad).reshape(n_flat_pad, 128).astype(jnp.int8)

    kernel = _make_nll_sum_kernel(c_pad)

    partials = pl.pallas_call(
        kernel,
        out_shape=jax.ShapeDtypeStruct((_NUM_CORE_SLICES, 8, 128), jnp.float32),
        grid_spec=pltpu.PrefetchScalarGridSpec(
            num_scalar_prefetch=0,
            grid=(_NUM_CORE_SLICES, steps),
            in_specs=[
                pl.BlockSpec((tile_flat, 128), lambda ci, si, _s=steps: (ci * _s + si, 0)),
                pl.BlockSpec((tile_flat, 128), lambda ci, si, _s=steps: (ci * _s + si, 0)),
            ],
            out_specs=pl.BlockSpec((1, 8, 128), lambda ci, si: (ci, 0, 0)),
            scratch_shapes=[pltpu.VMEM((8, 128), jnp.float32)],   # resident vreg-shaped accumulator
        ),
        compiler_params=pltpu.CompilerParams(
            dimension_semantics=("parallel", "arbitrary"),
            vmem_limit_bytes=_VMEM_LIMIT,
        ),
    )(x1_flat, tgt_flat)

    # ---- O(1) scalar epilogue on the combined per-core partial sums ----
    total = jnp.sum(partials[:, 0, 0])
    v1 = -total / jnp.float32(n)                  # F.nll_loss(x1, x2), reduction='mean'
    v2 = v1 * jnp.float32(SCALE)                  # v1 * scale_factor
    v3 = jnp.float32(1.0) + (v2 - v2)             # softmax of a single element (keeps NaN/Inf dependence)
    if dropout_key is None:
        dropout_key = jax.random.PRNGKey(0)
    # TODO(synk): Bernoulli(0.5) via jax.random; not bit-matched to torch's dropout RNG stream.
    keep = jax.random.bernoulli(dropout_key, 0.5)
    v4 = jnp.where(keep, v3 * jnp.float32(2.0), jnp.float32(0.0))
    v5 = -v4                                      # F.nll_loss(v4, v4.T): single class, target 0 -> -v4
    return v5


if __name__ == "__main__":
    key = jax.random.PRNGKey(0)
    k_x1, k_drop = jax.random.split(key)
    # Small shapes consistent with the module's well-defined nll_loss form: N=16 rows, C=16 classes.
    x1 = jax.random.normal(k_x1, (16, 16), dtype=jnp.float32)
    x2 = jnp.zeros((16,), dtype=jnp.int32)

    result = model_forward(x1, x2, dropout_key=k_drop)
    jax.block_until_ready(result)

    # Reference check (same epilogue, same dropout draw).
    v3_ref = jnp.float32(1.0)
    keep_ref = jax.random.bernoulli(k_drop, 0.5)
    expected = -jnp.where(keep_ref, v3_ref * 2.0, 0.0)
    assert jnp.allclose(result, expected, atol=1e-5, rtol=1e-5), (result, expected)

    print("KERNEL_OK")
</pallas_src>

<mosaic_0001>
module attributes {stable_mosaic.version = 11 : i64} {
  func.func @kernel(%arg0: i32, %arg1: i32, %arg2: memref<32x128xf32, #tpu.memory_space<vmem>>, %arg3: memref<32x128xi8, #tpu.memory_space<vmem>>, %arg4: memref<1x8x128xf32, #tpu.memory_space<vmem>>, %arg5: memref<8x128xf32, #tpu.memory_space<vmem>>) attributes {dimension_semantics = [#tpu.dimension_semantics<parallel>, #tpu.dimension_semantics<arbitrary>], iteration_bounds = array<i64: 2, 1>, scalar_prefetch = 0 : i64, scratch_operands = 1 : i64, tpu.core_type = #tpu.core_type<tc>, window_params = [{transform_indices = @transform_0, window_bounds = array<i64: 32, 128>}, {transform_indices = @transform_1, window_bounds = array<i64: 32, 128>}, {transform_indices = @transform_2, window_bounds = array<i64: 1, 8, 128>}]} {
    %c0_i32 = arith.constant 0 : i32
    %0 = arith.cmpi eq, %arg1, %c0_i32 : i32
    %1 = arith.extui %0 : i1 to i32
    %c0_i32_0 = arith.constant 0 : i32
    %2 = arith.cmpi ne, %1, %c0_i32_0 : i32
    scf.if %2 {
      %cst_11 = arith.constant 0.000000e+00 : f32
      %20 = vector.broadcast %cst_11 : f32 to vector<8x128xf32>
      %c0_12 = arith.constant 0 : index
      %c0_13 = arith.constant 0 : index
      %21 = vector.load %arg5[%c0_12, %c0_13] : memref<8x128xf32, #tpu.memory_space<vmem>>, vector<8x128xf32>
      tpu.vector_store %arg5[%c0_12, %c0_13], %20 {strides = array<i32>} : memref<8x128xf32, #tpu.memory_space<vmem>>, vector<8x128xf32>,
    } else {
    }
    %c0 = arith.constant 0 : index
    %c0_1 = arith.constant 0 : index
    %3 = vector.load %arg2[%c0, %c0_1] : memref<32x128xf32, #tpu.memory_space<vmem>>, vector<32x128xf32>
    %c0_2 = arith.constant 0 : index
    %c0_3 = arith.constant 0 : index
    %4 = vector.load %arg3[%c0_2, %c0_3] : memref<32x128xi8, #tpu.memory_space<vmem>>, vector<32x128xi8>
    %5 = arith.extsi %4 : vector<32x128xi8> to vector<32x128xi32>
    %6 = tpu.iota {dimensions = array<i32: 1>} : vector<32x128xi32>
    %c15_i32 = arith.constant 15 : i32
    %7 = vector.broadcast %c15_i32 : i32 to vector<32x128xi32>
    %8 = arith.andi %6, %7 : vector<32x128xi32>
    %9 = arith.cmpi eq, %8, %5 : vector<32x128xi32>
    %cst = arith.constant 0.000000e+00 : f32
    %10 = vector.broadcast %cst : f32 to vector<32x128xf32>
    %11 = arith.select %9, %3, %10 : vector<32x128xi1>, vector<32x128xf32>
    %c0_4 = arith.constant 0 : index
    %c0_5 = arith.constant 0 : index
    %12 = vector.load %arg5[%c0_4, %c0_5] : memref<8x128xf32, #tpu.memory_space<vmem>>, vector<8x128xf32>
    %13 = vector.shape_cast %11 : vector<32x128xf32> to vector<4x8x128xf32>
    %cst_6 = arith.constant dense<0.000000e+00> : vector<8x128xf32>
    %14 = vector.multi_reduction <add>, %13, %cst_6 [0] : vector<4x8x128xf32> to vector<8x128xf32>
    %15 = arith.addf %12, %14 : vector<8x128xf32>
    %c0_7 = arith.constant 0 : index
    %c0_8 = arith.constant 0 : index
    %16 = vector.load %arg5[%c0_7, %c0_8] : memref<8x128xf32, #tpu.memory_space<vmem>>, vector<8x128xf32>
    tpu.vector_store %arg5[%c0_7, %c0_8], %15 {strides = array<i32>} : memref<8x128xf32, #tpu.memory_space<vmem>>, vector<8x128xf32>,
    %c0_i32_9 = arith.constant 0 : i32
    %17 = arith.cmpi eq, %arg1, %c0_i32_9 : i32
    %18 = arith.extui %17 : i1 to i32
    %c0_i32_10 = arith.constant 0 : i32
    %19 = arith.cmpi ne, %18, %c0_i32_10 : i32
    scf.if %19 {
      %c0_11 = arith.constant 0 : index
      %c0_12 = arith.constant 0 : index
      %20 = vector.load %arg5[%c0_11, %c0_12] : memref<8x128xf32, #tpu.memory_space<vmem>>, vector<8x128xf32>
      %21 = vector.shape_cast %20 : vector<8x128xf32> to vector<1x8x128xf32>
      %cst_13 = arith.constant dense<0.000000e+00> : vector<1xf32>
      %22 = vector.multi_reduction <add>, %21, %cst_13 [1, 2] : vector<1x8x128xf32> to vector<1xf32>
      %23 = vector.shape_cast %22 : vector<1xf32> to vector<1x1x1xf32>
      %24 = vector.extract %23[0, 0, 0] : f32 from vector<1x1x1xf32>
      %25 = vector.broadcast %24 : f32 to vector<1x8x128xf32>
      %c0_14 = arith.constant 0 : index
      %c0_15 = arith.constant 0 : index
      %c0_16 = arith.constant 0 : index
      %26 = vector.load %arg4[%c0_14, %c0_15, %c0_16] : memref<1x8x128xf32, #tpu.memory_space<vmem>>, vector<1x8x128xf32>
      tpu.vector_store %arg4[%c0_14, %c0_15, %c0_16], %25 {strides = array<i32>} : memref<1x8x128xf32, #tpu.memory_space<vmem>>, vector<1x8x128xf32>,
    } else {
    }
    return
  }
  func.func @transform_0(%arg0: i32, %arg1: i32) -> (i32, i32) {
    %c1_i32 = arith.constant 1 : i32
    %0 = arith.muli %arg0, %c1_i32 : i32
    %1 = arith.addi %0, %arg1 : i32
    %c0_i32 = arith.constant 0 : i32
    %c0_i32_0 = arith.constant 0 : i32
    return %1, %c0_i32 : i32, i32
  }
  func.func @transform_1(%arg0: i32, %arg1: i32) -> (i32, i32) {
    %c1_i32 = arith.constant 1 : i32
    %0 = arith.muli %arg0, %c1_i32 : i32
    %1 = arith.addi %0, %arg1 : i32
    %c0_i32 = arith.constant 0 : i32
    %c0_i32_0 = arith.constant 0 : i32
    return %1, %c0_i32 : i32, i32
  }
  func.func @transform_2(%arg0: i32, %arg1: i32) -> (i32, i32, i32) {
    %c0_i32 = arith.constant 0 : i32
    %c0_i32_0 = arith.constant 0 : i32
    %c0_i32_1 = arith.constant 0 : i32
    return %arg0, %c0_i32, %c0_i32_0 : i32, i32, i32
  }
}

</mosaic_0001>

<bundles_post_ra>
// kernel: tpu_custom_call.1
= control target key start
LH: loop header
LB: loop body
LE: loop exit
PB: predicated region body
PF: predicated region fallthrough
CT: control target
= control target key end

     0   :  { %7 = vsyncpa [#allocation4], 0  ;;  %s859_s0 = inlined_call_operand.hbm [shape: f32[64,128], index: 0, kind: input, shape index: {}]   ;;  %s860_s1 = inlined_call_operand.hbm [shape: s8[64,128], index: 1, kind: input, shape index: {}]   ;;  %s861_s2 = inlined_call_operand.hbm [shape: f32[2,8,128], index: 2, kind: output, shape index: {}]  }
   0x1   :  { %9 = vsyncpa [#allocation4 + $0x1], 0 }
   0x2   :  { %10 = vsyncpa [#allocation7], 0 }
   0x3   :  { %12 = vsyncpa [#allocation7 + $0x1], 0 }
   0x4   :  { %13 = vsyncpa [#allocation5], 0 }
   0x5   :  { %15 = vsyncpa [#allocation5 + $0x1], 0  ;;  %s640_s9 = smov 0   ;;  %s642_s10 = smov 0  }
   0x6   :  { %s644_s11 = smov 0   ;;  %s646_s12 = smov 0  }
   0x7   :  { %s648_s13 = smov 0   ;;  %s650_s14 = smov 0  }
   0x8 LB: > { %s383_s15 = sadd.s32 4294967295, %s618_s14   ;;  %s384_s16 = sadd.s32 4294967294, %s618_s14   ;;  %s618_s14 = sphi %s650_s14, %s21_s14   ;;  %s614_s13 = sphi %s648_s13, %s880_s13   ;;  %s610_s12 = sphi %s646_s12, %s879_s12   ;;  %s606_s11 = sphi %s644_s11, %s878_s11   ;;  %s602_s10 = sphi %s642_s10, %s877_s10   ;;  %s598_s9 = sphi %s640_s9, %s876_s9  }
   0x9   : > { %s33_s17 = sadd.s32 1, %s614_s13  ;;  %s42_s18 = sadd.s32 1, %s606_s11 }
   0xa   : > { %p35_p0 = scmp.ge.s32.totalorder %s33_s17, 2  ;;  %p49_p1 = scmp.ne.s32.totalorder %s606_s11, %s602_s10 }
   0xb   : > { %p50_p2 = scmp.eq.s32.totalorder %s618_s14, 0  ;;  %p55_p3 = scmp.ne.s32.totalorder %s602_s10, %s598_s9 }
   0xc   : > { %s882_s17 = smov (%p35_p0, %s33_s17), 0  ;;  %p56_p5 = scmp.eq.s32.totalorder %s383_s15, 0 }
   0xd   : > { %p681_p4 = por %p50_p2, %p49_p1  ;;  %s39_s20 = ssub.s32 %s614_s13, %s882_s17 }
   0xe   : > { %p107_p6 = scmp.eq.s32.totalorder %s383_s15, 1  ;;  %p40_p7 = scmp.eq.s32.totalorder %s39_s20, 0 }
   0xf   : > { %p687_p8 = por %p56_p5, %p55_p3  ;;  %p113_p10 = scmp.eq.s32.totalorder %s384_s16, 1 }
  0x10   : > { %p691_p9 = por %p107_p6, %p49_p1  ;;  %p420_p13 = scmp.lt.s32.totalorder %s618_s14, 2 }
  0x11   : > { %s865_s21 = scalar_select %p687_p8, 1, 0 }
  0x12   : > { %s866_s22 = scalar_select %p691_p9, 1, 0 }
  0x13   : > { %s696_s23 = scalar_select %p40_p7, %s606_s11, %s42_s18  }
  0x14   : > { %p698_p11 = por %p113_p10, %p55_p3  ;;  %s705_s25 = sand.u32 1, %s606_s11  }
  0x15   : > { %s387_s26 = sshll.u32 %s705_s25, 5  ;;  %s400_s27 = sshll.u32 %s614_s13, 9 }
  0x16   : > { %s867_s24 = scalar_select %p698_p11, 1, 0 }
  0x17   : > { %s712_s30 = scalar_lea.hbm %s859_s0, %s400_s27  ;;  %s137_s3 = scalar_lea.vmem [#allocation3], %s387_s26 }
  0x18   : > { %s145_s4 = sshll.u32 %s137_s3, 4  ;;  %p718_p0 = pnand %p420_p13, %p681_p4  ;;  %s714_s4 = int_to_ptr.vmem [resolvable:$true] %s145_s4 }
  0x19   : > { %s134_s6 = scalar_lea.sflag [#allocation4], %s705_s25  ;;  %s472_s7 = scalar_lea.hbm %s712_s30, 512 }
  0x1a   : > { %p473_p2 = scmp.ne.s32.totalorder %s712_s30, %s472_s7  ;;  %p474_p3 = pneg %p718_p0 }
  0x1b   : > { %s477_s16 = scalar_lea.hbm %s859_s0, 1024  ;;  %p478_p4 = scmp.lt.u32.totalorder %s712_s30, %s859_s0 }
  0x1c   : > { %p475_p5 = pnand %p474_p3, %p473_p2  ;;  %p479_p7 = scmp.lt.u32.totalorder %s477_s16, %s472_s7 }
  0x1d   : > { %p481_p13 = scmp.lt.u32.totalorder %s472_s7, %s712_s30 }
  0x1e   : > { %p476_p6 = pneg %p475_p5  ;;  %p480_p10 = por %p479_p7, %p478_p4 }
  0x20   : > { %p482_p12 = por %p481_p13, %p480_p10 }
  0x22   : > { %p483_p1 = pnand %p482_p12, %p476_p6 }
  0x24   : > { %486 = shalt.err (!%p483_p1)
}
  0x25   : > { %s487_s20 = scalar_lea.vmem %s714_s4, 512  ;;  %s620_s26 = smov [#allocation3]  }
  0x26   : > { %p488_p2 = scmp.ne.s32.totalorder %s714_s4, %s487_s20  ;;  %s492_s27 = sshll.u32 %s620_s26, 4  ;;  %s493_s27 = int_to_ptr.vmem [resolvable:$false] %s492_s27 }
  0x27   : > { %s494_s28 = scalar_lea.vmem %s493_s27, 1024  ;;  %p495_p9 = scmp.lt.s32.totalorder %s714_s4, %s493_s27 }
  0x28   : > { %p490_p5 = pnand %p488_p2, %p474_p3  ;;  %p496_p4 = scmp.lt.s32.totalorder %s494_s28, %s487_s20 }
  0x2a   : > { %p491_p11 = pneg %p490_p5  ;;  %p497_p7 = por %p496_p4, %p495_p9 }
  0x2c   : > { %p498_p10 = pnand %p497_p7, %p491_p11 }
  0x2e   : > { %501 = shalt.err (!%p498_p10)
}
  0x2f   : > { %s621_s29 = smov 128   ;;  %s622_s3 = smov 8  }
  0x30   : > { %412 = dma.hbm_to_vmem [thread:$0]  (!%p718_p0), %s712_s30, 512, %s714_s4, %s134_s6, %s621_s29, %s621_s29, %s622_s3  }
  0x31   : > { %p172_p12 = scmp.lt.s32.totalorder %s618_s14, 3  ;;  %s390_s7 = sshll.u32 %s705_s25, 3 }
  0x32   : > { %s391_s8 = sshll.u32 %s614_s13, 7  ;;  %p869_p9 = scmp.ge.s32.totalorder %s618_s14, 1 }
  0x33   : > { %s763_s19 = scalar_lea.hbm %s860_s1, %s391_s8  ;;  %s159_s20 = scalar_lea.vmem [#allocation6], %s390_s7 }
  0x34   : > { %p756_p11 = pnand %p869_p9, %p172_p12  ;;  %s167_s26 = sshll.u32 %s159_s20, 4  ;;  %s168_s26 = int_to_ptr.vmem [resolvable:$true] %s167_s26 }
  0x35   : > { %s156_s30 = scalar_lea.sflag [#allocation7], %s705_s25  ;;  %s502_s4 = scalar_lea.hbm %s763_s19, 128 }
  0x36   : > { %s870_s15 = scalar_select %p756_p11, 1, 0 }
  0x37   : > { %p503_p1 = scmp.ne.s32.totalorder %s763_s19, %s502_s4  ;;  %s507_s28 = scalar_lea.hbm %s860_s1, 256 }
  0x38   : > { %p508_p2 = scmp.lt.u32.totalorder %s763_s19, %s860_s1  ;;  %p509_p5 = scmp.lt.u32.totalorder %s507_s28, %s502_s4 }
  0x39   : > { %p505_p6 = pnand %p503_p1, %p474_p3  ;;  %p511_p7 = scmp.lt.u32.totalorder %s502_s4, %s763_s19 }
  0x3a   : > { %p510_p4 = por %p509_p5, %p508_p2 }
  0x3b   : > { %p506_p13 = pneg %p505_p6 }
  0x3c   : > { %p512_p10 = por %p511_p7, %p510_p4 }
  0x3e   : > { %p513_p12 = pnand %p512_p10, %p506_p13 }
  0x40   : > { %516 = shalt.err (!%p513_p12)
}
  0x41   : > { %s517_s25 = scalar_lea.vmem %s168_s26, 128  ;;  %s623_s7 = smov [#allocation6]  }
  0x42   : > { %p518_p9 = scmp.ne.s32.totalorder %s168_s26, %s517_s25  ;;  %s522_s8 = sshll.u32 %s623_s7, 4  ;;  %s523_s8 = int_to_ptr.vmem [resolvable:$false] %s522_s8 }
  0x43   : > { %s524_s16 = scalar_lea.vmem %s523_s8, 256  ;;  %p525_p8 = scmp.lt.s32.totalorder %s168_s26, %s523_s8 }
  0x44   : > { %p520_p1 = pnand %p518_p9, %p474_p3  ;;  %p526_p11 = scmp.lt.s32.totalorder %s524_s16, %s517_s25 }
  0x46   : > { %p521_p6 = pneg %p520_p1  ;;  %p527_p2 = por %p526_p11, %p525_p8 }
  0x48   : > { %p528_p5 = pnand %p527_p2, %p521_p6 }
  0x4a   : > { %531 = shalt.err (!%p528_p5)
}
  0x4b   : > { %415 = dma.hbm_to_vmem [thread:$0]  (!%p718_p0), %s763_s19, 128, %s168_s26, %s156_s30  }
  0x4c   : > { %p871_p13 = scmp.ne.s32.totalorder %s870_s15, 0 }
  0x4d   : > { %s788_s18 = sand.u32 (!%p871_p13), 1, %s602_s10   ;;  %p872_p3 = scmp.ne.s32.totalorder (!%p871_p13), %s865_s21, 0 }
  0x4e   : > { %176 = sbr.rel (%p871_p13) target bundleno = 322 (0x142), region = 28  ;;  %s393_s20 = sshll.u32 (!%p871_p13), %s788_s18, 5 }
  0x4f   : > { %s179_s4 = scalar_lea.sflag (!%p871_p13), [#allocation4], %s788_s18  ;;  %s182_s6 = scalar_lea.vmem (!%p871_p13), [#allocation3], %s393_s20 }
  0x55   : > { %585 = dma.done.wait (%p872_p3), %s179_s4, 512  }
  0x56   : > { %587 = vsyncadd (%p872_p3), %s179_s4, 4294966784  ;;  %s394_s5 = sshll.u32 %s788_s18, 3  ;;  %s188_s15 = scalar_lea.sflag [#allocation7], %s788_s18 }
  0x57   : > { %s191_s19 = scalar_lea.vmem [#allocation6], %s394_s5 }
  0x58   : > { %589 = dma.done.wait (%p872_p3), %s188_s15, 128  }
  0x59   : > { %591 = vsyncadd (%p872_p3), %s188_s15, 4294967168  ;;  %v234_v0 = vlaneseq  ;;  %v229_v3 = vld [vmem:[%s191_s19] sm:$0xff]  ;;  %v227_v6 = vld [vmem:[%s182_s6 + $0x10] sm:$0xff]  ;;  %s216_s21 = scalar_lea.vmem [#allocation8], %s394_s5  ;;  %s397_s30 = sshll.u32 %s610_s12, 7 }
  0x5a   : > { %v225_v4 = vld [vmem:[%s182_s6] sm:$0xff]  ;;  %v226_v5 = vld [vmem:[%s182_s6 + $0x8] sm:$0xff]  ;;  %v230_v7 = vunpack.c.0.s8 %v229_v3  ;;  %v231_v8 = vunpack.c.1.s8 %v229_v3  ;;  %v232_v9 = vunpack.c.2.s8 %v229_v3  ;;  %v233_v10 = vunpack.c.3.s8 %v229_v3  ;;  %v228_v11 = vld [vmem:[%s182_s6 + $0x18] sm:$0xff]  ;;  %s280_s26 = sshll.u32 %s216_s21, 4  ;;  %s812_s3 = scalar_lea.hbm %s861_s2, %s397_s30  ;;  %s807_s26 = int_to_ptr.vmem [resolvable:$true] %s280_s26 }
  0x5b   : > { %v235_v1 = vand.u32 127, %v234_v0  ;;  %s267_s25 = scalar_lea.sflag [#allocation5], %s788_s18  ;;  %s532_s7 = scalar_lea.vmem %s807_s26, 128 }
  0x5c   : > { %p533_p8 = scmp.ne.s32.totalorder %s807_s26, %s532_s7  ;;  %p873_p0 = scmp.ne.s32.totalorder %s866_s22, 0 }
  0x5d   : > { %v236_v2 = vand.u32 15, %v235_v1  ;;  %s624_s12 = smov [#allocation8]  }
  0x5e   : > { %p534_p11 = pnand %p533_p8, %p873_p0  ;;  %s536_s8 = sshll.u32 %s624_s12, 4  ;;  %s537_s8 = int_to_ptr.vmem [resolvable:$false] %s536_s8 }
  0x5f   : > { %vm237_vm0 = vcmp.eq.s32.totalorder %v236_v2, %v230_v7  ;;  %vm238_vm1 = vcmp.eq.s32.totalorder %v236_v2, %v231_v8  ;;  %vm239_vm2 = vcmp.eq.s32.totalorder %v236_v2, %v232_v9  ;;  %vm240_vm3 = vcmp.eq.s32.totalorder %v236_v2, %v233_v10  ;;  %s538_s16 = scalar_lea.vmem %s537_s8, 256  ;;  %p539_p7 = scmp.lt.s32.totalorder %s807_s26, %s537_s8 }
  0x60   : > { %v241_v12 = vsel %vm237_vm0, %v225_v4, 0.0  ;;  %v242_v13 = vsel %vm238_vm1, %v226_v5, 0.0  ;;  %v243_v14 = vsel %vm239_vm2, %v227_v6, 0.0  ;;  %v244_v16 = vsel %vm240_vm3, %v228_v11, 0.0  ;;  %p535_p4 = pneg %p534_p11  ;;  %p540_p10 = scmp.lt.s32.totalorder %s538_s16, %s532_s7 }
  0x61   : > { %v246_v15 = vadd.f32 %v242_v13, %v241_v12 }
  0x62   : > { %p541_p12 = por %p540_p10, %p539_p7 }
  0x63   : > { %v247_v17 = vadd.f32 %v246_v15, %v243_v14 }
  0x64   : > { %p542_p9 = pnand %p541_p12, %p535_p4 }
  0x65   : > { %v248_v18 = vadd.f32 %v247_v17, %v244_v16 }
  0x67   : > { %255 = vadd.xlane.f32.xlu0 %v248_v18 }
  0xf4   : > { %v256_v19 = vpop.xlane.xlu0 %255 }
  0xf5   : > { %v257_v20 = vrot.slane %v256_v19, 4 }
  0xf7   : > { %v258_v21 = vadd.f32 %v257_v20, %v256_v19 }
  0xf9   : > { %v259_v22 = vrot.slane %v258_v21, 2 }
  0xfb   : > { %v260_v23 = vadd.f32 %v259_v22, %v258_v21 }
  0xfd   : > { %v261_v24 = vrot.slane %v260_v23, 1 }
  0xff   : > { %v262_v25 = vadd.f32 %v261_v24, %v260_v23 }
 0x101   : > { %401 = vpush %v262_v25 }
 0x132   : > { %s402_s27 = spop %401 }
 0x133   : > { %v264_v26 = vstv %s402_s27 }
 0x134   : > { %265 = vst [vmem:[%s216_s21] sm:$0xff] %v264_v26 }
 0x135   : > { %545 = shalt.err (!%p542_p9)
}
 0x136   : > { %s546_s18 = scalar_lea.hbm %s812_s3, 128  ;;  %s550_s6 = scalar_lea.hbm %s861_s2, 256 }
 0x137   : > { %p547_p1 = scmp.ne.s32.totalorder %s812_s3, %s546_s18  ;;  %p551_p5 = scmp.lt.u32.totalorder %s812_s3, %s861_s2 }
 0x138   : > { %p552_p13 = scmp.lt.u32.totalorder %s550_s6, %s546_s18  ;;  %p554_p8 = scmp.lt.u32.totalorder %s546_s18, %s812_s3 }
 0x139   : > { %p548_p6 = pnand %p547_p1, %p873_p0 }
 0x13a   : > { %p553_p3 = por %p552_p13, %p551_p5 }
 0x13b   : > { %p549_p2 = pneg %p548_p6 }
 0x13c   : > { %p555_p11 = por %p554_p8, %p553_p3 }
 0x13e   : > { %p556_p4 = pnand %p555_p11, %p549_p2 }
 0x140   : > { %559 = shalt.err (!%p556_p4)
}
 0x141   : > { %407 = dma.vmem_to_hbm [thread:$0]  (%p873_p0), %s807_s26, 128, %s812_s3, %s267_s25  }
 0x142 PF: > { %s292_s19 = sand.u32 1, %s598_s9   ;;  %p874_p7 = scmp.ne.s32.totalorder %s867_s24, 0 }
 0x143   : > { %p875_p10 = scmp.ge.s32.totalorder %s618_s14, 2  ;;  %s293_s21 = scalar_lea.sflag [#allocation5], %s292_s19 }
 0x145   : > { %p417_p12 = pnand %p875_p10, %p874_p7 }
 0x147   : > { %593 = dma.done.wait (!%p417_p12), %s293_s21, 128  }
 0x148   : > { %595 = vsyncadd (!%p417_p12), %s293_s21, 4294967168  ;;  %s21_s14 = sadd.s32 1, %s618_s14   ;;  %s876_s9 = smov %s602_s10 }
 0x149   : > { %p18_p9 = scmp.ge.s32.totalorder %s21_s14, 4   ;;  %s877_s10 = smov %s606_s11 }
 0x14a   : > { %s878_s11 = smov %s696_s23  ;;  %s879_s12 = smov %s614_s13 }
 0x14b   : > { %s880_s13 = smov %s882_s17  ;;  %20 = sbr.rel (!%p18_p9) target bundleno = 8 (0x8), region = 94 }
 0x152   :  { %298 = vsyncpa [#allocation4], 1 }
 0x153   :  { %300 = vsyncpa [#allocation4 + $0x1], 1 }
 0x154   :  { %301 = vsyncpa [#allocation7], 1 }
 0x155   :  { %303 = vsyncpa [#allocation7 + $0x1], 1 }
 0x156   :  { %304 = vsyncpa [#allocation5], 1 }
 0x157   :  { %306 = vsyncpa [#allocation5 + $0x1], 1 }

</bundles_post_ra>
